<compile_context>
chip_gen: v7x
topology: tpu7x:2x2x1
jax: 0.10.0
libtpu: 0.0.40
codegen_flags: <defaults>
</compile_context>

<pallas_src>
import jax
import jax.numpy as jnp
from jax.experimental import pallas as pl
from jax.experimental.pallas import tpu as pltpu  # noqa: F401  (TPU backend)

NUM_REPEATS = 9  # cat([v1,v2,v3,v8,v9,v10,v1,v2,v3], dim=1) -> 9 identical copies


def _make_mm_cat_kernel(M, K, N, num_repeats, out_dtype):
    out_cols = N * num_repeats

    def kernel(packed_ref, out_ref):
        slab = packed_ref[...]                    # (M+K, max(K,N)) f32, one load
        x1 = slab[0:M, 0:K]                       # (M, K)
        x2 = slab[M:M + K, 0:N]                   # (K, N)
        x2_rep = jnp.tile(x2, (1, num_repeats))   # (K, 9N), concat fused here

        if K == 1:
            # Rank-1 product: pure VPU broadcast multiply, no MXU.
            res = x1 * x2_rep                     # (M,1)*(1,9N) -> (M,9N)
        elif K <= 16 and out_cols <= 512:
            # Small K / small N: unrolled sum of outer products on the VPU,
            # f32 accumulation.  Cheaper than an MXU pass at these sizes.
            res = jnp.zeros((M, out_cols), jnp.float32)
            for k in range(K):
                res = res + x1[:, k:k + 1] * x2_rep[k:k + 1, :]
        else:
            # General fallback: one MXU dot, then lane replication.
            v = jnp.dot(x1, x2, preferred_element_type=jnp.float32)
            res = jnp.tile(v, (1, num_repeats))

        if res.dtype != out_dtype:
            res = res.astype(out_dtype)
        # One full-block store (lane layout is whatever (M, 9N) gives; at
        # N=2 this is a masked vst.msk which is fine -- see notes).
        out_ref[...] = res

    return kernel


def model_forward(x1, x2):
    M, K = x1.shape
    K2, N = x2.shape
    assert K == K2, "inner dims must match"
    out_cols = N * NUM_REPEATS
    out_dtype = jnp.promote_types(x1.dtype, x2.dtype)

    # --- wrapper-side packing: ONE input DMA instead of two ---------------
    # Cast once to f32 (v5e VPU has no native bf16), pad both operands to a
    # common column width and stack them into a single (M+K, cols) slab.
    cols = max(K, N)
    x1f = x1.astype(jnp.float32)
    x2f = x2.astype(jnp.float32)
    x1p = jnp.pad(x1f, ((0, 0), (0, cols - K)))
    x2p = jnp.pad(x2f, ((0, 0), (0, cols - N)))
    packed = jnp.concatenate([x1p, x2p], axis=0)   # (M+K, cols)

    kernel = _make_mm_cat_kernel(M, K, N, NUM_REPEATS, out_dtype)

    # Corrected cost estimate: dot flops + replication flops, per-array itemsizes.
    cost = pl.CostEstimate(
        flops=2 * M * N * K + M * out_cols,
        transcendentals=0,
        bytes_accessed=(x1.size * x1.dtype.itemsize
                        + x2.size * x2.dtype.itemsize
                        + M * out_cols * jnp.dtype(out_dtype).itemsize),
    )

    # Tiny problem -> single grid point, full-array blocks (block_shape equal
    # to the full array dims satisfies the (8,128) rule).
    return pl.pallas_call(
        kernel,
        out_shape=jax.ShapeDtypeStruct((M, out_cols), out_dtype),
        in_specs=[pl.BlockSpec((M + K, cols), lambda: (0, 0))],
        out_specs=pl.BlockSpec((M, out_cols), lambda: (0, 0)),
        cost_estimate=cost,
    )(packed)


if __name__ == "__main__":
    key = jax.random.PRNGKey(0)
    k1, k2 = jax.random.split(key)

    # Shapes implied by the module: x1 (3, 1), x2 (1, 2)
    x1 = jax.random.normal(k1, (3, 1), dtype=jnp.float32)
    x2 = jax.random.normal(k2, (1, 2), dtype=jnp.float32)

    out = model_forward(x1, x2)
    out = jax.block_until_ready(out)

    # Reference check in plain JAX (matches the PyTorch module semantics).
    v_ref = x1 @ x2
    ref = jnp.concatenate([v_ref] * NUM_REPEATS, axis=1)

    assert out.shape == (3, 2 * NUM_REPEATS), out.shape
    assert jnp.allclose(out, ref, atol=1e-5, rtol=1e-5), "mismatch vs reference"

    print("KERNEL_OK")
</pallas_src>

<mosaic_0001>
module attributes {stable_mosaic.version = 11 : i64} {
  func.func @kernel(%arg0: memref<4x2xf32, #tpu.memory_space<vmem>>, %arg1: memref<3x18xf32, #tpu.memory_space<vmem>>) attributes {dimension_semantics = [], scalar_prefetch = 0 : i64, scratch_operands = 0 : i64, tpu.core_type = #tpu.core_type<tc>} {
    %c0 = arith.constant 0 : index
    %c0_0 = arith.constant 0 : index
    %0 = vector.load %arg0[%c0, %c0_0] : memref<4x2xf32, #tpu.memory_space<vmem>>, vector<4x2xf32>
    %1 = vector.extract_strided_slice %0 {offsets = [0, 0], sizes = [3, 1], strides = [1, 1]} : vector<4x2xf32> to vector<3x1xf32>
    %2 = vector.extract_strided_slice %0 {offsets = [3, 0], sizes = [1, 2], strides = [1, 1]} : vector<4x2xf32> to vector<1x2xf32>
    %3 = tpu.concatenate %2, %2, %2, %2, %2, %2, %2, %2, %2 in 1 : vector<1x2xf32>, vector<1x2xf32>, vector<1x2xf32>, vector<1x2xf32>, vector<1x2xf32>, vector<1x2xf32>, vector<1x2xf32>, vector<1x2xf32>, vector<1x2xf32> -> vector<1x18xf32>
    %4 = vector.broadcast %1 : vector<3x1xf32> to vector<3x18xf32>
    %5 = vector.broadcast %3 : vector<1x18xf32> to vector<3x18xf32>
    %6 = arith.mulf %4, %5 : vector<3x18xf32>
    %c0_1 = arith.constant 0 : index
    %c0_2 = arith.constant 0 : index
    %7 = vector.load %arg1[%c0_1, %c0_2] : memref<3x18xf32, #tpu.memory_space<vmem>>, vector<3x18xf32>
    tpu.vector_store %arg1[%c0_1, %c0_2], %6 {strides = array<i32>} : memref<3x18xf32, #tpu.memory_space<vmem>>, vector<3x18xf32>,
    return
  }
}

</mosaic_0001>

<bundles_post_ra>
// kernel: tpu_custom_call.1
= control target key start
LH: loop header
LB: loop body
LE: loop exit
PB: predicated region body
PF: predicated region fallthrough
CT: control target
= control target key end

     0   :  { %s111_s8 = smov 6   ;;  %s112_s9 = smov 2   ;;  %v113_v1 = vmov 0   ;;  %s146_s0 = inlined_call_operand.vmem [shape: f32[4,2], index: 0, kind: input, shape index: {}]   ;;  %s147_s1 = inlined_call_operand.hbm [shape: f32[3,18], index: 1, kind: output, shape index: {}]  }
   0x1   :  { %v9_v0 = vld [vmem:[%s146_s0] sm:$0xf]  ;;  %86 = vset.pattern.permute.xlu0 %v113_v1 }
   0x2   :  { %17 = vrot.lane.b32.xlu1 %v9_v0, %s111_s8  ;;  %11 = vrot.lane.b32.xlu0 %v9_v0, %s112_s9 }
   0x3   :  { %6 = vsyncpa [#allocation3], 0  ;;  %s114_s10 = smov 8   ;;  %s115_s11 = smov 4   ;;  %vm35_vm0 = vcmask 15360   ;;  %vm37_vm1 = vcmask 31744   ;;  %v55_v9 = vlaneseq }
   0x4   :  { %s116_s12 = smov 10   ;;  %s117_s13 = smov 12   ;;  %vm39_vm2 = vcmask 48128   ;;  %vm41_vm3 = vcmask 64512   ;;  %vm43_vm4 = vcmask 80896   ;;  %vm45_vm5 = vcmask 97280  }
   0x5   :  { %s118_s14 = smov 14   ;;  %s119_s15 = smov 16   ;;  %v56_v12 = vshrl.u32 %v55_v9, 7  ;;  %vm47_vm6 = vcmask 113664   ;;  %vm49_vm7 = vcmask 130048   ;;  %vm60_vm8 = vcmask 141312  }
   0x6   :  { %20 = vrot.lane.b32.xlu1 %v9_v0, %s114_s10  ;;  %14 = vrot.lane.b32.xlu0 %v9_v0, %s115_s11  ;;  %s120_s0 = smov [#allocation2]  }
   0x7   :  { %v57_v16 = vsub.s32 3, %v56_v12  ;;  %s68_s16 = sshll.u32 %s120_s0, 4  ;;  %s69_s16 = int_to_ptr.vmem [resolvable:$true] %s68_s16 }
   0x8   :  { %s87_s17 = scalar_lea.vmem %s69_s16, 64  ;;  %p92_p1 = scmp.lt.s32.totalorder %s69_s16, %s69_s16 }
   0x9   :  { %p88_p0 = scmp.ne.s32.totalorder %s69_s16, %s87_s17  ;;  %p93_p2 = scmp.lt.s32.totalorder %s87_s17, %s87_s17 }
   0xa   :  { %23 = vrot.lane.b32.xlu1 %v9_v0, %s116_s12  ;;  %52 = vperm.xlu0 %86, %v9_v0  }
   0xb   :  { %p94_p3 = por %p93_p2, %p92_p1 }
   0xd   :  { %p95_p4 = pnand %p94_p3, %p88_p0 }
   0xe   :  { %26 = vrot.lane.b32.xlu1 %v9_v0, %s117_s13  ;;  %29 = vrot.lane.b32.xlu0 %v9_v0, %s118_s14 }
  0x12   :  { %32 = vrot.lane.b32.xlu1 %v9_v0, %s119_s15 }
  0x74   :  { %v18_v2 = vpop.permute.xlu1 %17  ;;  %v12_v3 = vpop.permute.xlu0 %11 }
  0x75   :  { %v36_v6 = vsel %vm35_vm0, %v9_v0, %v12_v3 }
  0x78   :  { %v21_v4 = vpop.permute.xlu1 %20  ;;  %v15_v5 = vpop.permute.xlu0 %14 }
  0x79   :  { %v38_v8 = vsel %vm37_vm1, %v36_v6, %v15_v5 }
  0x7a   :  { %v40_v10 = vsel %vm39_vm2, %v38_v8, %v18_v2 }
  0x7b   :  { %v42_v13 = vsel %vm41_vm3, %v40_v10, %v21_v4 }
  0x7c   :  { %v24_v7 = vpop.permute.xlu1 %23 }
  0x7d   :  { %v44_v15 = vsel %vm43_vm4, %v42_v13, %v24_v7 }
  0x80   :  { %v27_v11 = vpop.permute.xlu1 %26 }
  0x81   :  { %v46_v18 = vsel %vm45_vm5, %v44_v15, %v27_v11 }
  0x84   :  { %v33_v17 = vpop.permute.xlu1 %32 }
  0x89   :  { %v53_v14 = vpop.permute.xlu0 %52 }
  0x8d   :  { %v30_v19 = vpop.permute.xlu0 %29 }
  0x8e   :  { %v48_v20 = vsel %vm47_vm6, %v46_v18, %v30_v19 }
  0x8f   :  { %v50_v21 = vsel %vm49_vm7, %v48_v20, %v33_v17 }
  0x90   :  { %v58_v22 = vrot.slane %v50_v21, %v57_v16 }
  0x92   :  { %v59_v23 = vmul.f32 %v58_v22, %v53_v14 }
  0x94   :  { %61 = vst.msk [vmem:[#allocation2] sm:$0x7] %vm60_vm8, %v59_v23 }
  0x95   :  { %98 = shalt.err (!%p95_p4)
}
  0x96   :  { %s99_s20 = scalar_lea.hbm %s147_s1, 64 }
  0x97   :  { %p100_p5 = scmp.ne.s32.totalorder %s147_s1, %s99_s20  ;;  %p103_p6 = scmp.lt.u32.totalorder %s99_s20, %s147_s1 }
  0x99   :  { %p105_p7 = pnand %p103_p6, %p100_p5 }
  0x9b   :  { %108 = shalt.err (!%p105_p7)
}
  0x9c   :  { %71 = dma.vmem_to_hbm [thread:$0]  %s69_s16, 64, %s147_s1, [#allocation3]  }
  0x9d   :  { %109 = dma.done.wait [#allocation3], 64  }
  0x9e   :  { %110 = vsyncadd [#allocation3], 4294967232 }
  0x9f   :  { %75 = vsyncpa [#allocation3], 1 }

</bundles_post_ra>
